<compile_context>
chip_gen: v5e
topology: v5e:2x2
jax: 0.10.0
libtpu: 0.0.40
codegen_flags: <defaults>
</compile_context>

<pallas_src>
import jax
import jax.numpy as jnp
from jax.experimental import pallas as pl
from jax.experimental.pallas import tpu as pltpu


def _vmem_budget_bytes():
    """Generation-aware VMEM budget: ~3/4 of physical VMEM (96 MiB v5e/v6e, 48 MiB v7x)."""
    try:
        cap = int(pltpu.get_tpu_info().vmem_capacity_bytes)
    except Exception:
        cap = 64 * 1024 * 1024          # conservative fallback (v7x-sized)
    return max(16 * 1024 * 1024, (3 * cap) // 4)


def _batched_fc_scale(avg, mx, w1t, w2t):
    """One batched squeeze-excite FC over [avg; max].

    avg, mx: (bt, C) f32.  w1t: (C, Cr) f32.  w2t: (Cr, C) f32.
    Returns sigmoid(fc(avg) + fc(mx)) as (bt, C) f32 — a single w1 matmul,
    single SiLU and single w2 matmul regardless of bt.
    """
    bt = avg.shape[0]
    pooled = jnp.concatenate([avg, mx], axis=0)                        # (2*bt, C)
    h = jnp.dot(pooled, w1t, preferred_element_type=jnp.float32)       # (2*bt, Cr)
    h = h * jax.nn.sigmoid(h)                                          # SiLU
    a = jnp.dot(h, w2t, preferred_element_type=jnp.float32)            # (2*bt, C)
    attn = a[:bt] + a[bt:]                                             # (bt, C)
    return jax.nn.sigmoid(attn)


def _fused_call(x_flat, w1t, w2t, bt, vmem_limit):
    """Single-pass path: whole (C, HW) rows resident, `bt` batch rows per grid step."""
    B, C, HW = x_flat.shape
    Cr = w1t.shape[1]
    itemsize = jnp.dtype(x_flat.dtype).itemsize
    nb = pl.cdiv(B, bt)

    def kernel(x_ref, w1t_ref, w2t_ref, o_ref):
        x = x_ref[...]                                                 # (bt, C, HW), native dtype
        inv_hw = jnp.float32(1.0 / HW)
        avg = jnp.sum(x, axis=-1, dtype=jnp.float32) * inv_hw          # (bt, C)
        mx = jnp.max(x, axis=-1).astype(jnp.float32)                   # (bt, C)
        scale = _batched_fc_scale(avg, mx, w1t_ref[...], w2t_ref[...])
        scale = scale.astype(x.dtype)                                  # (bt, C)
        o_ref[...] = (x * scale[:, :, None]).astype(o_ref.dtype)       # broadcast over lanes

    w_bytes = (w1t.size + w2t.size) * 4
    cost = pl.CostEstimate(
        flops=4 * B * C * HW,
        transcendentals=3 * B * C,
        bytes_accessed=2 * B * C * HW * itemsize + w_bytes)

    return pl.pallas_call(
        kernel,
        out_shape=jax.ShapeDtypeStruct((B, C, HW), x_flat.dtype),
        grid_spec=pltpu.PrefetchScalarGridSpec(
            num_scalar_prefetch=0,
            grid=(nb,),
            in_specs=[
                pl.BlockSpec((bt, C, HW), lambda i: (i, 0, 0)),
                pl.BlockSpec((C, Cr), lambda i: (0, 0)),
                pl.BlockSpec((Cr, C), lambda i: (0, 0)),
            ],
            out_specs=pl.BlockSpec((bt, C, HW), lambda i: (i, 0, 0)),
        ),
        compiler_params=pltpu.CompilerParams(
            dimension_semantics=("parallel",),
            vmem_limit_bytes=vmem_limit),
        cost_estimate=cost,
    )(x_flat, w1t, w2t)


def _two_pass_call(x_flat, w1t, w2t, bt, hwt1, hwt2, vmem_limit):
    """General path: HW-tiled reduce pass (sum/max + fused FC -> scale), then scale pass."""
    B, C, HW = x_flat.shape
    Cr = w1t.shape[1]
    itemsize = jnp.dtype(x_flat.dtype).itemsize
    nb = pl.cdiv(B, bt)
    nhw1 = pl.cdiv(HW, hwt1)
    nhw2 = pl.cdiv(HW, hwt2)
    needs_mask = (HW % hwt1) != 0

    # -------- pass 1: reduce over HW tiles, finalize with fused FC -> per-channel scale
    def reduce_kernel(x_ref, w1t_ref, w2t_ref, scale_ref, sum_acc, max_acc):
        hw_i = pl.program_id(1)
        last = pl.num_programs(1) - 1

        def accumulate(part_sum, part_max):
            @pl.when(hw_i == 0)
            def _():
                sum_acc[...] = part_sum
                max_acc[...] = part_max

            @pl.when(hw_i > 0)
            def _():
                sum_acc[...] = sum_acc[...] + part_sum
                max_acc[...] = jnp.maximum(max_acc[...], part_max)

        def partials(masked):
            x = x_ref[...]                                             # (bt, C, hwt1)
            if masked:
                col = jax.lax.broadcasted_iota(jnp.int32, x.shape, 2)
                valid = (hw_i * hwt1 + col) < HW
                x_s = jnp.where(valid, x, jnp.zeros((), x.dtype))
                x_m = jnp.where(valid, x, jnp.full((), -jnp.inf, x.dtype))
            else:
                x_s = x
                x_m = x
            part_sum = jnp.sum(x_s, axis=-1, keepdims=True, dtype=jnp.float32)   # (bt,C,1)
            part_max = jnp.max(x_m, axis=-1, keepdims=True).astype(jnp.float32)  # (bt,C,1)
            return part_sum, part_max

        if needs_mask:
            # Mask only the tail tile; interior tiles pay no iota/select work.
            @pl.when(hw_i < last)
            def _():
                accumulate(*partials(False))

            @pl.when(hw_i == last)
            def _():
                accumulate(*partials(True))
        else:
            accumulate(*partials(False))

        @pl.when(hw_i == last)
        def _():
            inv_hw = jnp.float32(1.0 / HW)
            avg = sum_acc[...][:, :, 0] * inv_hw                       # (bt, C)
            mx = max_acc[...][:, :, 0]                                 # (bt, C)
            scale = _batched_fc_scale(avg, mx, w1t_ref[...], w2t_ref[...])
            scale_ref[...] = scale[:, :, None]                         # (bt, C, 1) f32

    w_bytes = (w1t.size + w2t.size) * 4
    cost1 = pl.CostEstimate(
        flops=3 * B * C * HW,
        transcendentals=3 * B * C,
        bytes_accessed=B * C * HW * itemsize + w_bytes + B * C * 4)

    scale = pl.pallas_call(
        reduce_kernel,
        out_shape=jax.ShapeDtypeStruct((B, C, 1), jnp.float32),
        grid_spec=pltpu.PrefetchScalarGridSpec(
            num_scalar_prefetch=0,
            grid=(nb, nhw1),
            in_specs=[
                pl.BlockSpec((bt, C, hwt1), lambda i, j: (i, 0, j)),
                pl.BlockSpec((C, Cr), lambda i, j: (0, 0)),
                pl.BlockSpec((Cr, C), lambda i, j: (0, 0)),
            ],
            out_specs=pl.BlockSpec((bt, C, 1), lambda i, j: (i, 0, 0)),
            scratch_shapes=[pltpu.VMEM((bt, C, 1), jnp.float32),
                            pltpu.VMEM((bt, C, 1), jnp.float32)],
        ),
        compiler_params=pltpu.CompilerParams(
            dimension_semantics=("parallel", "arbitrary"),
            vmem_limit_bytes=vmem_limit),
        cost_estimate=cost1,
    )(x_flat, w1t, w2t)

    # -------- pass 2: out = x * scale, fully parallel, lane-dense stores
    def scale_kernel(x_ref, s_ref, o_ref):
        x = x_ref[...]                            # (bt, C, hwt2), native dtype (no f32 copy)
        s = s_ref[...].astype(x.dtype)            # (bt, C, 1)
        o_ref[...] = (x * s).astype(o_ref.dtype)

    cost2 = pl.CostEstimate(
        flops=B * C * HW,
        transcendentals=0,
        bytes_accessed=2 * B * C * HW * itemsize + B * C * 4)

    return pl.pallas_call(
        scale_kernel,
        out_shape=jax.ShapeDtypeStruct((B, C, HW), x_flat.dtype),
        grid_spec=pltpu.PrefetchScalarGridSpec(
            num_scalar_prefetch=0,
            grid=(nb, nhw2),
            in_specs=[
                pl.BlockSpec((bt, C, hwt2), lambda i, j: (i, 0, j)),
                pl.BlockSpec((bt, C, 1), lambda i, j: (i, 0, 0)),
            ],
            out_specs=pl.BlockSpec((bt, C, hwt2), lambda i, j: (i, 0, j)),
        ),
        compiler_params=pltpu.CompilerParams(
            dimension_semantics=("parallel", "parallel"),
            vmem_limit_bytes=vmem_limit),
        cost_estimate=cost2,
    )(x_flat, scale)


def channel_attention(x_nchw, w1, w2, *, batch_tile=None, hw_tile=None, force_two_pass=False):
    """x_nchw: (B, C, H, W); w1: (C//sq, C); w2: (C, C//sq). Returns (B, C, H, W)."""
    B, C, H, W = x_nchw.shape
    HW = H * W
    itemsize = jnp.dtype(x_nchw.dtype).itemsize
    x_flat = x_nchw.reshape(B, C, HW)

    # Hoisted once: weights transposed + cast to f32 so the in-kernel FC is a plain
    # (rows,C)@(C,Cr) / (rows,Cr)@(Cr,C) MXU pair with no per-grid-step casts.
    w1t = jnp.asarray(w1, jnp.float32).T      # (C, Cr)
    w2t = jnp.asarray(w2, jnp.float32).T      # (Cr, C)

    budget = _vmem_budget_bytes()
    row_bytes = C * HW * itemsize             # one full (C, HW) slab for one batch row

    # Single-pass (2x HBM traffic) whenever in+out double-buffered bt=1 slabs fit;
    # only then fall back to the 3x-traffic two-pass path.
    use_fused = (not force_two_pass) and (4 * row_bytes <= budget)

    if use_fused:
        if batch_tile is None:
            by_budget = max(1, budget // (4 * row_bytes))
            by_block = max(1, (2 * 1024 * 1024) // max(1, row_bytes))   # ~2 MiB blocks
            bt = max(1, min(B, by_budget, by_block))
            # keep >= 2 grid steps so both v7x TensorCores get work
            min_steps = 2 if B >= 2 else 1
            while bt > 1 and -(-B // bt) < min_steps:
                bt -= 1
            # prefer bt | B: no pooling over padded tail rows
            while bt > 1 and B % bt != 0:
                bt -= 1
        else:
            bt = max(1, min(batch_tile, B))
        out_flat = _fused_call(x_flat, w1t, w2t, bt, budget)
    else:
        if batch_tile is None:
            bt = 1
        else:
            bt = max(1, min(batch_tile, B))
        per_lane = bt * C * itemsize          # bytes per unit of HW tile width

        def pick(tile_budget):
            n = tile_budget // max(1, per_lane)
            if n >= HW:
                return HW
            return max(128, (n // 128) * 128)

        if hw_tile is None:
            hwt1 = pick(budget // 3)          # pass 1 streams only x (2 live buffers)
            hwt2 = pick(budget // 6)          # pass 2 streams x and out (4 live buffers)
        else:
            hwt1 = min(hw_tile, HW)
            hwt2 = min(hw_tile, HW)
        out_flat = _two_pass_call(x_flat, w1t, w2t, bt, hwt1, hwt2, budget)

    return out_flat.reshape(B, C, H, W)


def channel_attention_ref(x, w1, w2):
    """Pure-JAX reference mirroring the PyTorch forward."""
    avg = jnp.mean(x, axis=(2, 3), keepdims=True)
    mx = jnp.max(x, axis=(2, 3), keepdims=True)

    def fc(v):
        vflat = v[:, :, 0, 0]
        h = vflat @ w1.T
        h = h * jax.nn.sigmoid(h)
        return (h @ w2.T)[:, :, None, None]

    attn = fc(avg) + fc(mx)
    return x * jax.nn.sigmoid(attn)


def _make_inputs(key, B, C, H, W, squeeze_factor):
    Cr = max(1, C // squeeze_factor)
    kx, k1, k2 = jax.random.split(key, 3)
    x = jax.random.normal(kx, (B, C, H, W), dtype=jnp.float32)
    # Conv2d (Cout, Cin, 1, 1) weights used as plain (Cout, Cin) matrices;
    # PyTorch-default uniform +/- 1/sqrt(fan_in) init.
    bound1 = 1.0 / float(C) ** 0.5
    bound2 = 1.0 / float(Cr) ** 0.5
    w1 = jax.random.uniform(k1, (Cr, C), jnp.float32, -bound1, bound1)
    w2 = jax.random.uniform(k2, (C, Cr), jnp.float32, -bound2, bound2)
    return x, w1, w2


if __name__ == "__main__":
    key = jax.random.PRNGKey(0)
    k_a, k_b, k_c = jax.random.split(key, 3)

    # Case 1: small shape -> fused single-pass path (num_feat=16, sq=4).
    x, w1, w2 = _make_inputs(k_a, 2, 16, 16, 16, squeeze_factor=4)
    out = jax.block_until_ready(channel_attention(x, w1, w2))
    ref = channel_attention_ref(x, w1, w2)
    assert out.shape == x.shape
    assert jnp.allclose(out, ref, atol=1e-5, rtol=1e-5), "fused path mismatch vs reference"

    # Case 2: force the two-pass reduce/scale path with HW tiling
    # (HW = 20*20 = 400 -> 128-wide tiles with a gated masked tail tile).
    x2, w12, w22 = _make_inputs(k_b, 2, 16, 20, 20, squeeze_factor=4)
    out2 = jax.block_until_ready(
        channel_attention(x2, w12, w22, force_two_pass=True, hw_tile=128, batch_tile=1))
    ref2 = channel_attention_ref(x2, w12, w22)
    assert out2.shape == x2.shape
    assert jnp.allclose(out2, ref2, atol=1e-5, rtol=1e-5), "two-pass path mismatch vs reference"

    # Case 3: fused path with a multi-row batch tile (exercises the batched FC with bt > 1).
    x3, w13, w23 = _make_inputs(k_c, 8, 16, 8, 8, squeeze_factor=4)
    out3 = jax.block_until_ready(channel_attention(x3, w13, w23))
    ref3 = channel_attention_ref(x3, w13, w23)
    assert out3.shape == x3.shape
    assert jnp.allclose(out3, ref3, atol=1e-5, rtol=1e-5), "batched fused path mismatch vs reference"

    print("KERNEL_OK")
</pallas_src>

<mosaic_0001>
module attributes {stable_mosaic.version = 11 : i64} {
  func.func @kernel(%arg0: i32, %arg1: memref<1x16x256xf32, #tpu.memory_space<vmem>>, %arg2: memref<16x4xf32, #tpu.memory_space<vmem>>, %arg3: memref<4x16xf32, #tpu.memory_space<vmem>>, %arg4: memref<1x16x256xf32, #tpu.memory_space<vmem>>) attributes {dimension_semantics = [#tpu.dimension_semantics<parallel>], iteration_bounds = array<i64: 2>, scalar_prefetch = 0 : i64, scratch_operands = 0 : i64, tpu.core_type = #tpu.core_type<tc>, window_params = [{transform_indices = @transform_0, window_bounds = array<i64: 1, 16, 256>}, {pipeline_mode = #tpu.pipeline_mode<synchronous>, transform_indices = @transform_1, window_bounds = array<i64: 16, 4>}, {pipeline_mode = #tpu.pipeline_mode<synchronous>, transform_indices = @transform_2, window_bounds = array<i64: 4, 16>}, {transform_indices = @transform_3, window_bounds = array<i64: 1, 16, 256>}]} {
    %c0 = arith.constant 0 : index
    %c0_0 = arith.constant 0 : index
    %c0_1 = arith.constant 0 : index
    %0 = vector.load %arg1[%c0, %c0_0, %c0_1] : memref<1x16x256xf32, #tpu.memory_space<vmem>>, vector<1x16x256xf32>
    %cst = arith.constant dense<0.000000e+00> : vector<1x16xf32>
    %1 = vector.multi_reduction <add>, %0, %cst [2] : vector<1x16x256xf32> to vector<1x16xf32>
    %cst_2 = arith.constant 3.906250e-03 : f32
    %2 = vector.broadcast %cst_2 : f32 to vector<1x16xf32>
    %3 = arith.mulf %1, %2 : vector<1x16xf32>
    %cst_3 = arith.constant dense<0xFF800000> : vector<1x16xf32>
    %4 = vector.multi_reduction <maximumf>, %0, %cst_3 [2] : vector<1x16x256xf32> to vector<1x16xf32>
    %c0_4 = arith.constant 0 : index
    %c0_5 = arith.constant 0 : index
    %5 = vector.load %arg2[%c0_4, %c0_5] : memref<16x4xf32, #tpu.memory_space<vmem>>, vector<16x4xf32>
    %c0_6 = arith.constant 0 : index
    %c0_7 = arith.constant 0 : index
    %6 = vector.load %arg3[%c0_6, %c0_7] : memref<4x16xf32, #tpu.memory_space<vmem>>, vector<4x16xf32>
    %7 = tpu.concatenate %3, %4 in 0 : vector<1x16xf32>, vector<1x16xf32> -> vector<2x16xf32>
    %cst_8 = arith.constant dense<0.000000e+00> : vector<2x4xf32>
    %8 = tpu.matmul %7, %5, %cst_8 {dimension_numbers = #tpu.dot_dimension_numbers<[1], [0], [0], [1], [0, 0, 1, 1], [], []>} : vector<2x16xf32>, vector<16x4xf32>, vector<2x4xf32> -> vector<2x4xf32>
    %9 = arith.negf %8 : vector<2x4xf32>
    %10 = math.exp %9 : vector<2x4xf32>
    %cst_9 = arith.constant 1.000000e+00 : f32
    %11 = vector.broadcast %cst_9 : f32 to vector<2x4xf32>
    %12 = arith.addf %11, %10 : vector<2x4xf32>
    %13 = arith.divf %11, %12 : vector<2x4xf32>
    %14 = arith.mulf %8, %13 : vector<2x4xf32>
    %cst_10 = arith.constant dense<0.000000e+00> : vector<2x16xf32>
    %15 = tpu.matmul %14, %6, %cst_10 {dimension_numbers = #tpu.dot_dimension_numbers<[1], [0], [0], [1], [0, 0, 1, 1], [], []>} : vector<2x4xf32>, vector<4x16xf32>, vector<2x16xf32> -> vector<2x16xf32>
    %16 = vector.extract_strided_slice %15 {offsets = [0, 0], sizes = [1, 16], strides = [1, 1]} : vector<2x16xf32> to vector<1x16xf32>
    %17 = vector.extract_strided_slice %15 {offsets = [1, 0], sizes = [1, 16], strides = [1, 1]} : vector<2x16xf32> to vector<1x16xf32>
    %18 = arith.addf %16, %17 : vector<1x16xf32>
    %19 = arith.negf %18 : vector<1x16xf32>
    %20 = math.exp %19 : vector<1x16xf32>
    %cst_11 = arith.constant 1.000000e+00 : f32
    %21 = vector.broadcast %cst_11 : f32 to vector<1x16xf32>
    %22 = arith.addf %21, %20 : vector<1x16xf32>
    %23 = arith.divf %21, %22 : vector<1x16xf32>
    %24 = vector.shape_cast %23 : vector<1x16xf32> to vector<1x16x1xf32>
    %25 = vector.broadcast %24 : vector<1x16x1xf32> to vector<1x16x256xf32>
    %26 = arith.mulf %0, %25 : vector<1x16x256xf32>
    %c0_12 = arith.constant 0 : index
    %c0_13 = arith.constant 0 : index
    %c0_14 = arith.constant 0 : index
    %27 = vector.load %arg4[%c0_12, %c0_13, %c0_14] : memref<1x16x256xf32, #tpu.memory_space<vmem>>, vector<1x16x256xf32>
    tpu.vector_store %arg4[%c0_12, %c0_13, %c0_14], %26 {strides = array<i32>} : memref<1x16x256xf32, #tpu.memory_space<vmem>>, vector<1x16x256xf32>,
    return
  }
  func.func @transform_0(%arg0: i32) -> (i32, i32, i32) {
    %c0_i32 = arith.constant 0 : i32
    %c0_i32_0 = arith.constant 0 : i32
    %c0_i32_1 = arith.constant 0 : i32
    return %arg0, %c0_i32, %c0_i32_0 : i32, i32, i32
  }
  func.func @transform_1(%arg0: i32) -> (i32, i32) {
    %c0_i32 = arith.constant 0 : i32
    %c0_i32_0 = arith.constant 0 : i32
    %c0_i32_1 = arith.constant 0 : i32
    return %c0_i32, %c0_i32_0 : i32, i32
  }
  func.func @transform_2(%arg0: i32) -> (i32, i32) {
    %c0_i32 = arith.constant 0 : i32
    %c0_i32_0 = arith.constant 0 : i32
    %c0_i32_1 = arith.constant 0 : i32
    return %c0_i32, %c0_i32_0 : i32, i32
  }
  func.func @transform_3(%arg0: i32) -> (i32, i32, i32) {
    %c0_i32 = arith.constant 0 : i32
    %c0_i32_0 = arith.constant 0 : i32
    %c0_i32_1 = arith.constant 0 : i32
    return %arg0, %c0_i32, %c0_i32_0 : i32, i32, i32
  }
}

</mosaic_0001>

<bundles_post_ra>
// kernel: tpu_custom_call.1
= control target key start
LH: loop header
LB: loop body
LE: loop exit
PB: predicated region body
PF: predicated region fallthrough
CT: control target
= control target key end

     0   :  { %8 = vsyncpa [#allocation3], 0  ;;  %s799_s0 = inlined_call_operand.hbm [shape: f32[2,16,256], index: 0, kind: input, shape index: {}]   ;;  %s800_s1 = inlined_call_operand.vmem [shape: f32[16,4], index: 1, kind: input, shape index: {}]   ;;  %s801_s2 = inlined_call_operand.vmem [shape: f32[4,16], index: 2, kind: input, shape index: {}]   ;;  %s802_s3 = inlined_call_operand.hbm [shape: f32[2,16,256], index: 3, kind: output, shape index: {}]  }
   0x1   :  { %10 = vsyncpa [#allocation3 + $0x1], 0 }
   0x2   :  { %11 = vsyncpa [#allocation4], 0 }
   0x3   :  { %13 = vsyncpa [#allocation4 + $0x1], 0  ;;  %s639_s12 = smov 0   ;;  %s641_s13 = smov 0  }
   0x4   :  { %s643_s14 = smov 0   ;;  %s645_s15 = smov 0  }
   0x5 LB: > { %s660_s16 = sadd.s32 4294967295, %s613_s15   ;;  %s435_s17 = sadd.s32 4294967294, %s613_s15   ;;  %s613_s15 = sphi %s645_s15, %s812_s15   ;;  %s609_s14 = sphi %s643_s14, %s811_s14   ;;  %s605_s13 = sphi %s641_s13, %s810_s13   ;;  %s601_s12 = sphi %s639_s12, %s809_s12  }
   0x6   : > { %s664_s18 = sadd.s32 1, %s613_s15   ;;  %s26_s19 = sadd.s32 1, %s609_s14 }
   0x7   : > { %s23_s20 = ssub.s32 %s613_s15, %s664_s18  ;;  %p33_p0 = scmp.ne.s32.totalorder %s609_s14, %s605_s13 }
   0x8   : > { %p24_p1 = scmp.eq.s32.totalorder %s23_s20, 0  ;;  %p34_p2 = scmp.eq.s32.totalorder %s613_s15, 0 }
   0x9   : > { %p39_p3 = scmp.ne.s32.totalorder %s605_s13, %s601_s12  ;;  %p40_p4 = scmp.eq.s32.totalorder %s660_s16, 0 }
   0xa   : > { %s676_s21 = scalar_select %p24_p1, %s609_s14, %s26_s19  }
   0xb   : > { %p678_p5 = por %p34_p2, %p33_p0  ;;  %p682_p6 = por %p40_p4, %p39_p3 }
   0xc   : > { %p105_p7 = scmp.eq.s32.totalorder %s660_s16, 1  ;;  %p111_p8 = scmp.eq.s32.totalorder %s435_s17, 1 }
   0xd   : > { %p468_p10 = scmp.lt.s32.totalorder %s613_s15, 2  ;;  %s137_s26 = sand.u32 1, %s609_s14  }
   0xe   : > { %p689_p11 = por %p105_p7, %p33_p0  ;;  %p693_p12 = por %p111_p8, %p39_p3 }
   0xf   : > { %s454_s27 = sshll.u32 %s613_s15, 5  ;;  %s438_s28 = sshll.u32 %s137_s26, 5 }
  0x10   : > { %s146_s4 = scalar_lea.hbm %s799_s0, %s454_s27  ;;  %s141_s6 = scalar_lea.vmem [#allocation2], %s438_s28 }
  0x11   : > { %s147_s5 = sshll.u32 %s146_s4, 4  ;;  %s149_s7 = sshll.u32 %s141_s6, 4  ;;  %s148_s5 = int_to_ptr.hbm [resolvable:$true] %s147_s5  ;;  %s150_s7 = int_to_ptr.vmem [resolvable:$true] %s149_s7 }
  0x12   : > { %p704_p13 = pnand %p468_p10, %p678_p5  ;;  %p441_p0 = scmp.ge.s32.totalorder %s613_s15, 1 }
  0x13   : > { %p157_p1 = scmp.lt.s32.totalorder %s613_s15, 3  ;;  %s138_s9 = scalar_lea.sflag [#allocation3], %s137_s26 }
  0x14   : > { %s517_s10 = sshra.s32 %s148_s5, 4  ;;  %p521_p3 = pneg %p704_p13  ;;  %s518_s10 = int_to_ptr.hbm [resolvable:$true] %s517_s10 }
  0x15   : > { %s519_s11 = scalar_lea.hbm %s518_s10, 32  ;;  %s524_s20 = scalar_lea.hbm %s799_s0, 64 }
  0x16   : > { %p520_p2 = scmp.ne.s32.totalorder %s518_s10, %s519_s11  ;;  %p525_p5 = scmp.lt.s32.totalorder %s518_s10, %s799_s0 }
  0x17   : > { %p526_p8 = scmp.lt.s32.totalorder %s524_s20, %s519_s11 }
  0x18   : > { %p522_p4 = pnand %p521_p3, %p520_p2 }
  0x19   : > { %p527_p10 = por %p526_p8, %p525_p5 }
  0x1a   : > { %p523_p7 = pneg %p522_p4 }
  0x1c   : > { %p528_p9 = pnand %p527_p10, %p523_p7 }
  0x1e   : > { %531 = shalt.err (!%p528_p9)
}
  0x1f   : > { %s615_s26 = smov 256   ;;  %s616_s28 = smov 16  }
  0x20   : > { %463 = dma.hbm_to_vmem [thread:$0]  (!%p704_p13), %s148_s5, 512, %s150_s7, %s138_s9, %s615_s26, %s615_s26, %s616_s28  }
  0x21   : > { %p158_p2 = pnand %p441_p0, %p157_p1 }
  0x22   : > { %s725_s29 = sand.u32 (!%p158_p2), 1, %s605_s13  }
  0x23   : > { %161 = sbr.rel (%p158_p2) target bundleno = 604 (0x25c), region = 32  ;;  %s442_s30 = sshll.u32 (!%p158_p2), %s725_s29, 5 }
  0x24   : > { %s164_s4 = scalar_lea.sflag (!%p158_p2), [#allocation3], %s725_s29  ;;  %s167_s6 = scalar_lea.vmem (!%p158_p2), [#allocation2], %s442_s30 }
  0x28   : > { %592 = dma.done.wait (%p682_p6), %s164_s4, 512  }
  0x29   : > { %594 = vsyncadd (%p682_p6), %s164_s4, 4294966784  ;;  %v735_v0 = vld [vmem:[%s167_s6] sm:$0xff]  ;;  %v737_v1 = vld [vmem:[%s167_s6 + $0x8] sm:$0xff]  ;;  %v214_v10 = vlaneseq  ;;  %vm219_vm0 = vcmask 130112   ;;  %vm228_vm1 = vcmask 1040384   ;;  %vm230_vm2 = vcmask 130048  }
  0x2a   : > { %v203_v2 = vmax.f32 %v735_v0, %v737_v1  ;;  %v195_v3 = vadd.f32 %v737_v1, %v735_v0  ;;  %v743_v4 = vld [vmem:[%s167_s6 + $0x10] sm:$0xff]  ;;  %v745_v5 = vld [vmem:[%s167_s6 + $0x18] sm:$0xff]  ;;  %v210_v8 = vld [vmem:[%s800_s1 + $0x8] sm:$0xff]  ;;  %vm278_vm3 = vcmask 1043456   ;;  %vm274_vm8 = vcmask 31744   ;;  %s190_s11 = scalar_lea.vmem [#allocation5], %s442_s30 }
  0x2b   : > { %v206_v6 = vmax.f32 %v743_v4, %v745_v5  ;;  %v198_v7 = vadd.f32 %v745_v5, %v743_v4  ;;  %v209_v9 = vld [vmem:[%s800_s1] sm:$0xff]  ;;  %248 = vmatpush.msra.mxu0 %v210_v8  ;;  %v215_v13 = vand.u32 127, %v214_v10  ;;  %v327_v42 = vshrl.u32 %v214_v10, 7  ;;  %s455_s17 = sshll.u32 %s660_s16, 5  ;;  %s359_s27 = sshll.u32 %s190_s11, 4  ;;  %s360_s27 = int_to_ptr.vmem [resolvable:$true] %s359_s27 }
  0x2c   : > { %204 = vmax.xlane.f32.xlu1 %v203_v2  ;;  %196 = vadd.xlane.f32.xlu0 %v195_v3  ;;  %v211_v26 = vld [vmem:[%s801_s2] sm:$0xf]  ;;  %s358_s22 = scalar_lea.hbm %s802_s3, %s455_s17  ;;  %s347_s28 = scalar_lea.sflag [#allocation4], %s725_s29 }
  0x2d   : > { %249 = vmatpush.msra.mxu0 %v209_v9  ;;  %v217_v14 = vadd.s32 4294967288, %v215_v13  ;;  %446 = vmatpush.msk.msra.mxu1 %vm278_vm3, %v211_v26  ;;  %v334_v43 = vadd.s32 8, %v327_v42  ;;  %s361_s26 = sshll.u32 %s358_s22, 4  ;;  %s567_s23 = scalar_lea.hbm %s802_s3, 64  ;;  %s362_s26 = int_to_ptr.hbm [resolvable:$true] %s361_s26 }
  0x2e   : > { %506 = vset.pattern.permute.xlu2 %v327_v42  ;;  %s561_s30 = sshra.s32 %s362_s26, 4  ;;  %s562_s30 = int_to_ptr.hbm [resolvable:$true] %s561_s30 }
  0x2f   : > { %508 = vset.pattern.permute.xlu0 %v334_v43  ;;  %s563_s16 = scalar_lea.hbm %s562_s30, 32  ;;  %p568_p0 = scmp.lt.s32.totalorder %s562_s30, %s802_s3 }
  0x30   : > { %p564_p6 = scmp.ne.s32.totalorder %s562_s30, %s563_s16  ;;  %p569_p1 = scmp.lt.s32.totalorder %s567_s23, %s563_s16 }
  0x32   : > { %p565_p9 = pnand %p564_p6, %p689_p11  ;;  %p570_p3 = por %p569_p1, %p568_p0 }
  0x34   : > { %207 = vmax.xlane.f32.xlu1 %v206_v6  ;;  %199 = vadd.xlane.f32.xlu0 %v198_v7  ;;  %p566_p13 = pneg %p565_p9 }
  0x36   : > { %p571_p4 = pnand %p570_p3, %p566_p13 }
  0x9f   : > { %v205_v11 = vpop.xlane.xlu1 %204  ;;  %v197_v12 = vpop.xlane.xlu0 %196 }
  0xa0   : > { %v201_v15 = vmul.f32 0.00390625, %v197_v12  ;;  %v224_v20 = vperm.slane %v205_v11, %v215_v13 }
  0xa2   : > { %v216_v21 = vperm.slane %v201_v15, %v215_v13 }
  0xa7   : > { %v208_v16 = vpop.xlane.xlu1 %207  ;;  %v200_v17 = vpop.xlane.xlu0 %199 }
  0xa8   : > { %v225_v18 = vperm.slane %v208_v16, %v217_v14  ;;  %v202_v19 = vmul.f32 0.00390625, %v200_v17 }
  0xaa   : > { %v218_v22 = vperm.slane %v202_v19, %v217_v14  ;;  %v226_v24 = vsel %vm219_vm0, %v225_v18, %v224_v20 }
  0xac   : > { %v220_v23 = vsel %vm219_vm0, %v218_v22, %v216_v21 }
  0xad   : > { %v229_v25 = vsel %vm228_vm1, %v220_v23, %v226_v24 }
  0xae   : > { %444 = vmatmul.msk.f32.vlgmr.msra.gmra.mxu0 %vm230_vm2, %v229_v25 }
 0x12b   : > { %v251_v27 = vpop.f32.mrf.mxu0 }
 0x12c   : > { %v445_v28 = vmul.f32 -1.442695, %v251_v27 }
 0x12e   : > { %509 = vpow2.f32 %v445_v28 }
 0x134   : > { %v510_v29 = vpop.eup %509 }
 0x135   : > { %v257_v30 = vadd.f32 1.0, %v510_v29 }
 0x137   : > { %511 = vrcp.f32 %v257_v30  ;;  %v269_v34 = vand.u32 2147483648, %v257_v30  ;;  %v267_v36 = vand.u32 2147483647, %v257_v30  ;;  %vm263_vm5 = vweird.f32 %v257_v30 }
 0x139   : > { %v270_v38 = vor.u32 1.1754944e-38, %v269_v34  ;;  %vm268_vm7 = vcmp.eq.f32.partialorder %v267_v36, 8.507059e+37 }
 0x13d   : > { %v512_v31 = vpop.eup %511 }
 0x13e   : > { %v259_v32 = vmul.f32 %v512_v31, %v257_v30  ;;  %vm264_vm4 = vweird.f32 %v512_v31 }
 0x13f   : > { %vm265_vm6 = vmor %vm263_vm5, %vm264_vm4 }
 0x140   : > { %v260_v33 = vsub.f32 1.0, %v259_v32 }
 0x142   : > { %v261_v35 = vmul.f32 %v512_v31, %v260_v33 }
 0x144   : > { %v262_v37 = vadd.f32 %v512_v31, %v261_v35 }
 0x146   : > { %v266_v39 = vsel %vm265_vm6, %v512_v31, %v262_v37 }
 0x147   : > { %v271_v40 = vsel %vm268_vm7, %v270_v38, %v266_v39 }
 0x148   : > { %v273_v41 = vmul.f32 %v271_v40, %v251_v27 }
 0x14a   : > { %447 = vmatmul.msk.f32.vlgmr.msra.gmra.mxu1 %vm274_vm8, %v273_v41 }
 0x1c7   : > { %v299_v44 = vpop.f32.mrf.mxu1 }
 0x1c8   : > { %v303_v45 = vrot.slane %v299_v44, 1 }
 0x1ca   : > { %v305_v46 = vadd.f32 %v303_v45, %v299_v44 }
 0x1cc   : > { %v448_v47 = vmul.f32 -1.442695, %v305_v46 }
 0x1ce   : > { %513 = vpow2.f32 %v448_v47 }
 0x1d4   : > { %v514_v48 = vpop.eup %513 }
 0x1d5   : > { %v309_v49 = vadd.f32 1.0, %v514_v48 }
 0x1d7   : > { %515 = vrcp.f32 %v309_v49  ;;  %v321_v53 = vand.u32 2147483648, %v309_v49  ;;  %v319_v55 = vand.u32 2147483647, %v309_v49  ;;  %vm315_vm10 = vweird.f32 %v309_v49 }
 0x1d9   : > { %v322_v57 = vor.u32 1.1754944e-38, %v321_v53  ;;  %vm320_vm12 = vcmp.eq.f32.partialorder %v319_v55, 8.507059e+37 }
 0x1dd   : > { %v516_v50 = vpop.eup %515 }
 0x1de   : > { %v311_v51 = vmul.f32 %v516_v50, %v309_v49  ;;  %vm316_vm9 = vweird.f32 %v516_v50 }
 0x1df   : > { %vm317_vm11 = vmor %vm315_vm10, %vm316_vm9 }
 0x1e0   : > { %v312_v52 = vsub.f32 1.0, %v311_v51 }
 0x1e2   : > { %v313_v54 = vmul.f32 %v516_v50, %v312_v52 }
 0x1e4   : > { %v314_v56 = vadd.f32 %v516_v50, %v313_v54 }
 0x1e6   : > { %v318_v58 = vsel %vm317_vm11, %v516_v50, %v314_v56 }
 0x1e7   : > { %v323_v59 = vsel %vm320_vm12, %v322_v57, %v318_v58 }
 0x1e8   : > { %v325_v60 = vperm.slane %v323_v59, 0 }
 0x1ea   : > { %330 = vperm.xlu2 %506, %v325_v60  }
 0x1f2   : > { %507 = vset.pattern.permute.xlu2 %v334_v43 }
 0x1fa   : > { %336 = vperm.xlu2 %507, %v325_v60  }
 0x244   : > { %v331_v61 = vpop.permute.xlu2 %330 }
 0x245   : > { %v338_v62 = vmul.f32 %v331_v61, %v735_v0  ;;  %v339_v63 = vmul.f32 %v331_v61, %v737_v1 }
 0x247   : > { %342 = vst [vmem:[%s190_s11] sm:$0xff] %v338_v62 }
 0x248   : > { %343 = vst [vmem:[%s190_s11 + $0x8] sm:$0xff] %v339_v63 }
 0x254   : > { %v337_v2 = vpop.permute.xlu2 %336 }
 0x255   : > { %v340_v3 = vmul.f32 %v337_v2, %v743_v4  ;;  %v341_v0 = vmul.f32 %v337_v2, %v745_v5 }
 0x257   : > { %344 = vst [vmem:[%s190_s11 + $0x10] sm:$0xff] %v340_v3 }
 0x258   : > { %345 = vst [vmem:[%s190_s11 + $0x18] sm:$0xff] %v341_v0 }
 0x259   : > { %574 = shalt.err (!%p571_p4)
}
 0x25a   : > { %s617_s29 = smov 256   ;;  %s618_s8 = smov 16  }
 0x25b   : > { %458 = dma.vmem_to_hbm [thread:$0]  (%p689_p11), %s360_s27, 512, %s362_s26, %s347_s28, %s617_s29, %s617_s29, %s618_s8  }
 0x25c PF: > { %s376_s9 = sand.u32 1, %s601_s12   ;;  %p808_p7 = scmp.ge.s32.totalorder %s613_s15, 2 }
 0x25d   : > { %s377_s10 = scalar_lea.sflag [#allocation4], %s376_s9 }
 0x25e   : > { %p465_p5 = pnand %p808_p7, %p693_p12 }
 0x260   : > { %p466_p8 = pneg %p465_p5 }
 0x262   : > { %596 = dma.done.wait (%p466_p8), %s377_s10, 512  }
 0x263   : > { %598 = vsyncadd (%p466_p8), %s377_s10, 4294966784  ;;  %p16_p10 = scmp.ge.s32.totalorder %s664_s18, 4   ;;  %s809_s12 = smov %s605_s13 }
 0x264   : > { %s810_s13 = smov %s609_s14  ;;  %s811_s14 = smov %s676_s21 }
 0x265   : > { %s812_s15 = smov %s664_s18  ;;  %18 = sbr.rel (!%p16_p10) target bundleno = 5 (0x5), region = 77 }
 0x26a   :  { %383 = vsyncpa [#allocation3], 1 }
 0x26b   :  { %385 = vsyncpa [#allocation3 + $0x1], 1 }
 0x26c   :  { %386 = vsyncpa [#allocation4], 1 }
 0x26d   :  { %388 = vsyncpa [#allocation4 + $0x1], 1 }

</bundles_post_ra>
